<compile_context>
chip_gen: v7x
topology: tpu7x:2x2x1
jax: 0.10.0
libtpu: 0.0.40
codegen_flags: <defaults>
</compile_context>

<pallas_src>
import jax
import jax.numpy as jnp
from jax.experimental import pallas as pl
from jax.experimental.pallas import tpu as pltpu


def _fa_diff_l1_kernel(lhs_ref, rhs_ref, o_ref, acc_ref):
    """One grid step: a (TP, TQ) tile of |mat2 - mat1| for one batch block.

    lhs_ref : (Bt, TP, 2C) bf16   rows of [f2^T | f1^T]
    rhs_ref : (Bt, 2C, TQ) bf16   columns of [f2 ; -f1]
    o_ref   : (1, 1, 1)    f32    per-(batch-block, p-tile) partial L1 sum
    acc_ref : (8, TQ)      f32    lane-shaped VPU accumulator over the q axis
    """
    q = pl.program_id(2)

    @pl.when(q == 0)
    def _():
        acc_ref[...] = jnp.zeros_like(acc_ref)

    # Single fused MXU matmul: (f2^T f2 - f1^T f1) tile, f32 accumulation.
    diff = jnp.einsum("bpc,bcq->bpq", lhs_ref[...], rhs_ref[...],
                      preferred_element_type=jnp.float32)
    bt, tp, tq = diff.shape

    # Lane-wise |.| + accumulate (pure VPU): fold batch and sublane groups by
    # elementwise vreg adds; no cross-lane movement here.
    folded = jnp.abs(diff).sum(axis=0)                       # (TP, TQ)
    folded = folded.reshape(tp // 8, 8, tq).sum(axis=0)      # (8, TQ)
    acc_ref[...] += folded

    # Single cross-lane (XLU) reduction per (batch-block, p-tile), not per tile.
    @pl.when(q == pl.num_programs(2) - 1)
    def _():
        o_ref[...] = jnp.sum(acc_ref[...]).reshape(1, 1, 1)


def _pick_tile(hw):
    """Largest 128-aligned Gram tile that divides HW (None -> XLA fallback)."""
    for t in (512, 256, 128):   # 512 f32 tile = 1 MiB: safe on v5e..v7x VMEM
        if hw % t == 0:
            return t
    return None


def _pick_batch_block(b, tp, tq, c2, num_p):
    """Fold batch elements per step under a conservative VMEM budget."""
    # f32 diff tile (counted twice for the |.| temporary) + double-buffered
    # bf16 lhs/rhs tiles, per batch element per step.
    per_b = 2 * tp * tq * 4 + 2 * 2 * (tp * c2 + c2 * tq) * 2
    budget = 8 * 1024 * 1024          # leaves headroom under v5e's 16 MiB scoped
    max_bt = max(1, budget // per_b)
    bt = 1
    for d in range(1, b + 1):
        if b % d == 0 and d <= max_bt:
            bt = d
    # v7x megacore: keep at least 2 parallel grid steps when the batch allows.
    if b >= 2 and (b // bt) * num_p < 2:
        for d in range(b // 2, 0, -1):
            if b % d == 0:
                bt = d
                break
    return bt


def fa_loss(feature1, feature2, loss_weight=1.0, subscale=0.0625):
    """Pallas implementation of FALoss.forward.

    loss_weight is accepted but unused, exactly like the PyTorch forward().
    """
    del loss_weight  # the reference forward() never applies it
    s = int(round(1.0 / subscale))

    B, C, H, W = feature1.shape
    assert H % s == 0 and W % s == 0, "spatial dims must be divisible by the pool size"
    Hp, Wp = H // s, W // s
    HW = Hp * Wp

    def _avg_pool(x):
        # AvgPool2d(s): reshape + mean, pure glue, f32 for accuracy.
        return x.astype(jnp.float32).reshape(B, C, Hp, s, Wp, s).mean(axis=(3, 5))

    f1 = _avg_pool(feature1).reshape(B, C, HW)
    f2 = _avg_pool(feature2).reshape(B, C, HW)

    tile = _pick_tile(HW)
    if tile is None:
        # Tiny / misaligned pooled sizes: fused XLA is strictly better than a
        # Pallas call dominated by launch + per-step overhead.
        mat1 = jnp.einsum("bcp,bcq->bpq", f1, f1)
        mat2 = jnp.einsum("bcp,bcq->bpq", f2, f2)
        return (jnp.sum(jnp.abs(mat2 - mat1)) / float(HW) ** 2).astype(jnp.float32)

    # K-concat fusion (wrapper-side glue on the tiny pooled tensors):
    #   lhs = [f2^T | f1^T] : (B, HW, 2C),  rhs = [f2 ; -f1] : (B, 2C, HW)
    #   lhs @ rhs == f2^T f2 - f1^T f1 == mat2 - mat1   (negation exact in bf16)
    lhs = jnp.concatenate([jnp.swapaxes(f2, 1, 2), jnp.swapaxes(f1, 1, 2)],
                          axis=-1).astype(jnp.bfloat16)
    rhs = jnp.concatenate([f2, -f1], axis=1).astype(jnp.bfloat16)
    c2 = 2 * C

    tp = tq = tile
    num_p = HW // tp
    num_q = HW // tq
    bt = _pick_batch_block(B, tp, tq, c2, num_p)
    num_blocks = B // bt

    partials = pl.pallas_call(
        _fa_diff_l1_kernel,
        out_shape=jax.ShapeDtypeStruct((num_blocks * num_p, 1, 1), jnp.float32),
        grid_spec=pltpu.PrefetchScalarGridSpec(
            num_scalar_prefetch=0,
            grid=(num_blocks, num_p, num_q),
            in_specs=[
                pl.BlockSpec((bt, tp, c2), lambda g, p, q: (g, p, 0)),
                pl.BlockSpec((bt, c2, tq), lambda g, p, q: (g, 0, q)),
            ],
            out_specs=pl.BlockSpec((1, 1, 1),
                                   lambda g, p, q: (g * num_p + p, 0, 0)),
            scratch_shapes=[pltpu.VMEM((8, tq), jnp.float32)],
        ),
        compiler_params=pltpu.CompilerParams(
            # batch & p tiles are independent -> megacore-shardable on v7x;
            # q is the L1-accumulation axis -> sequential.
            dimension_semantics=("parallel", "parallel", "arbitrary"),
        ),
    )(lhs, rhs)

    # TODO(synk): no custom_vjp is defined; for training, route gradients
    # through the pure-JAX reference path or add a custom VJP.
    return (jnp.sum(partials) / float(HW) ** 2).astype(jnp.float32)


def _fa_loss_ref_f32(feature1, feature2, subscale=0.0625):
    """Pure-f32 JAX mirror of the PyTorch module."""
    s = int(round(1.0 / subscale))

    def pool(x):
        B, C, H, W = x.shape
        return x.astype(jnp.float32).reshape(B, C, H // s, s, W // s, s).mean(axis=(3, 5))

    f1 = pool(feature1)
    f2 = pool(feature2)
    B, C, H, W = f1.shape
    f1 = f1.reshape(B, C, H * W)
    f2 = f2.reshape(B, C, H * W)
    mat1 = jnp.einsum("bcp,bcq->bpq", f1, f1)
    mat2 = jnp.einsum("bcp,bcq->bpq", f2, f2)
    return jnp.sum(jnp.abs(mat2 - mat1)) / float(H * W) ** 2


def _fa_loss_ref_bf16(feature1, feature2, subscale=0.0625):
    """Same numerics as the kernel (bf16 operands, f32 accumulation)."""
    s = int(round(1.0 / subscale))

    def pool(x):
        B, C, H, W = x.shape
        return x.astype(jnp.float32).reshape(B, C, H // s, s, W // s, s).mean(axis=(3, 5))

    f1 = pool(feature1)
    f2 = pool(feature2)
    B, C, H, W = f1.shape
    f1 = f1.reshape(B, C, H * W).astype(jnp.bfloat16).astype(jnp.float32)
    f2 = f2.reshape(B, C, H * W).astype(jnp.bfloat16).astype(jnp.float32)
    mat1 = jnp.einsum("bcp,bcq->bpq", f1, f1)
    mat2 = jnp.einsum("bcp,bcq->bpq", f2, f2)
    return jnp.sum(jnp.abs(mat2 - mat1)) / float(H * W) ** 2


if __name__ == "__main__":
    key = jax.random.PRNGKey(0)
    k1, k2 = jax.random.split(key)

    # B=2, C=8, H=W=256; AvgPool2d(16) -> pooled 16x16, HW=256 -> Pallas path.
    B, C, H, W = 2, 8, 256, 256
    feature1 = jax.random.normal(k1, (B, C, H, W), dtype=jnp.float32)
    feature2 = jax.random.normal(k2, (B, C, H, W), dtype=jnp.float32)

    out = jax.block_until_ready(fa_loss(feature1, feature2, loss_weight=1.0))
    ref_bf16 = jax.block_until_ready(_fa_loss_ref_bf16(feature1, feature2))
    ref_f32 = jax.block_until_ready(_fa_loss_ref_f32(feature1, feature2))

    # Exact-logic check: same bf16 operands / f32 accumulation as the kernel.
    assert jnp.allclose(out, ref_bf16, rtol=2e-3, atol=1e-5), (out, ref_bf16)
    # Close to the pure-f32 PyTorch semantics (bf16 MXU operands only).
    assert jnp.allclose(out, ref_f32, rtol=5e-2, atol=1e-4), (out, ref_f32)

    # Tiny pooled shape (HW=16) routes to the fused-XLA fallback.
    small1 = jax.random.normal(k1, (2, 4, 64, 64), dtype=jnp.float32)
    small2 = jax.random.normal(k2, (2, 4, 64, 64), dtype=jnp.float32)
    out_small = jax.block_until_ready(fa_loss(small1, small2, loss_weight=1.0))
    ref_small = jax.block_until_ready(_fa_loss_ref_f32(small1, small2))
    assert jnp.allclose(out_small, ref_small, rtol=1e-4, atol=1e-6), (out_small, ref_small)

    print("KERNEL_OK")
</pallas_src>

<mosaic_0001>
module attributes {stable_mosaic.version = 11 : i64} {
  func.func @_fa_diff_l1_kernel(%arg0: i32, %arg1: i32, %arg2: i32, %arg3: memref<1x256x16xbf16, #tpu.memory_space<vmem>>, %arg4: memref<1x16x256xbf16, #tpu.memory_space<vmem>>, %arg5: memref<1x1x1xf32, #tpu.memory_space<vmem>>, %arg6: memref<8x256xf32, #tpu.memory_space<vmem>>) attributes {dimension_semantics = [#tpu.dimension_semantics<parallel>, #tpu.dimension_semantics<parallel>, #tpu.dimension_semantics<arbitrary>], iteration_bounds = array<i64: 2, 1, 1>, scalar_prefetch = 0 : i64, scratch_operands = 1 : i64, tpu.core_type = #tpu.core_type<tc>, window_params = [{transform_indices = @transform_0, window_bounds = array<i64: 1, 256, 16>}, {transform_indices = @transform_1, window_bounds = array<i64: 1, 16, 256>}, {transform_indices = @transform_2, window_bounds = array<i64: 1, 1, 1>}]} {
    %c0_i32 = arith.constant 0 : i32
    %0 = arith.cmpi eq, %arg2, %c0_i32 : i32
    %1 = arith.extui %0 : i1 to i32
    %c0_i32_0 = arith.constant 0 : i32
    %2 = arith.cmpi ne, %1, %c0_i32_0 : i32
    scf.if %2 {
      %cst_14 = arith.constant 0.000000e+00 : f32
      %16 = vector.broadcast %cst_14 : f32 to vector<8x256xf32>
      %c0_15 = arith.constant 0 : index
      %c0_16 = arith.constant 0 : index
      %17 = vector.load %arg6[%c0_15, %c0_16] : memref<8x256xf32, #tpu.memory_space<vmem>>, vector<8x256xf32>
      tpu.vector_store %arg6[%c0_15, %c0_16], %16 {strides = array<i32>} : memref<8x256xf32, #tpu.memory_space<vmem>>, vector<8x256xf32>,
    } else {
    }
    %c0 = arith.constant 0 : index
    %c0_1 = arith.constant 0 : index
    %c0_2 = arith.constant 0 : index
    %3 = vector.load %arg3[%c0, %c0_1, %c0_2] : memref<1x256x16xbf16, #tpu.memory_space<vmem>>, vector<1x256x16xbf16>
    %c0_3 = arith.constant 0 : index
    %c0_4 = arith.constant 0 : index
    %c0_5 = arith.constant 0 : index
    %4 = vector.load %arg4[%c0_3, %c0_4, %c0_5] : memref<1x16x256xbf16, #tpu.memory_space<vmem>>, vector<1x16x256xbf16>
    "tpu.trace_start"() <{level = 10 : i32, message = "bpc,bcq->bpq"}> : () -> ()
    %cst = arith.constant dense<0.000000e+00> : vector<1x256x256xf32>
    %5 = tpu.matmul %3, %4, %cst {dimension_numbers = #tpu.dot_dimension_numbers<[2], [1], [1], [2], [0, 0, 0, 1, 1, 2], [0], [0]>} : vector<1x256x16xbf16>, vector<1x16x256xbf16>, vector<1x256x256xf32> -> vector<1x256x256xf32>
    "tpu.trace_stop"() : () -> ()
    %6 = math.absf %5 : vector<1x256x256xf32>
    %cst_6 = arith.constant dense<0.000000e+00> : vector<256x256xf32>
    %7 = vector.multi_reduction <add>, %6, %cst_6 [0] : vector<1x256x256xf32> to vector<256x256xf32>
    %8 = vector.shape_cast %7 : vector<256x256xf32> to vector<32x8x256xf32>
    %cst_7 = arith.constant dense<0.000000e+00> : vector<8x256xf32>
    %9 = vector.multi_reduction <add>, %8, %cst_7 [0] : vector<32x8x256xf32> to vector<8x256xf32>
    %c0_8 = arith.constant 0 : index
    %c0_9 = arith.constant 0 : index
    %10 = vector.load %arg6[%c0_8, %c0_9] : memref<8x256xf32, #tpu.memory_space<vmem>>, vector<8x256xf32>
    %11 = arith.addf %10, %9 : vector<8x256xf32>
    %c0_10 = arith.constant 0 : index
    %c0_11 = arith.constant 0 : index
    %12 = vector.load %arg6[%c0_10, %c0_11] : memref<8x256xf32, #tpu.memory_space<vmem>>, vector<8x256xf32>
    tpu.vector_store %arg6[%c0_10, %c0_11], %11 {strides = array<i32>} : memref<8x256xf32, #tpu.memory_space<vmem>>, vector<8x256xf32>,
    %c0_i32_12 = arith.constant 0 : i32
    %13 = arith.cmpi eq, %arg2, %c0_i32_12 : i32
    %14 = arith.extui %13 : i1 to i32
    %c0_i32_13 = arith.constant 0 : i32
    %15 = arith.cmpi ne, %14, %c0_i32_13 : i32
    scf.if %15 {
      %c0_14 = arith.constant 0 : index
      %c0_15 = arith.constant 0 : index
      %16 = vector.load %arg6[%c0_14, %c0_15] : memref<8x256xf32, #tpu.memory_space<vmem>>, vector<8x256xf32>
      %17 = vector.shape_cast %16 : vector<8x256xf32> to vector<1x8x256xf32>
      %cst_16 = arith.constant dense<0.000000e+00> : vector<1xf32>
      %18 = vector.multi_reduction <add>, %17, %cst_16 [1, 2] : vector<1x8x256xf32> to vector<1xf32>
      %19 = vector.shape_cast %18 : vector<1xf32> to vector<1x1x1xf32>
      %20 = vector.extract %19[0, 0, 0] : f32 from vector<1x1x1xf32>
      %21 = vector.broadcast %20 : f32 to vector<1x1x1xf32>
      %c0_17 = arith.constant 0 : index
      %c0_18 = arith.constant 0 : index
      %c0_19 = arith.constant 0 : index
      %22 = vector.load %arg5[%c0_17, %c0_18, %c0_19] : memref<1x1x1xf32, #tpu.memory_space<vmem>>, vector<1x1x1xf32>
      tpu.vector_store %arg5[%c0_17, %c0_18, %c0_19], %21 {strides = array<i32>} : memref<1x1x1xf32, #tpu.memory_space<vmem>>, vector<1x1x1xf32>,
    } else {
    }
    return
  }
  func.func @transform_0(%arg0: i32, %arg1: i32, %arg2: i32) -> (i32, i32, i32) {
    %c0_i32 = arith.constant 0 : i32
    %c0_i32_0 = arith.constant 0 : i32
    return %arg0, %arg1, %c0_i32 : i32, i32, i32
  }
  func.func @transform_1(%arg0: i32, %arg1: i32, %arg2: i32) -> (i32, i32, i32) {
    %c0_i32 = arith.constant 0 : i32
    %c0_i32_0 = arith.constant 0 : i32
    return %arg0, %c0_i32, %arg2 : i32, i32, i32
  }
  func.func @transform_2(%arg0: i32, %arg1: i32, %arg2: i32) -> (i32, i32, i32) {
    %c1_i32 = arith.constant 1 : i32
    %0 = arith.muli %arg0, %c1_i32 : i32
    %1 = arith.addi %0, %arg1 : i32
    %c0_i32 = arith.constant 0 : i32
    %c0_i32_0 = arith.constant 0 : i32
    %c0_i32_1 = arith.constant 0 : i32
    return %1, %c0_i32, %c0_i32_0 : i32, i32, i32
  }
}

</mosaic_0001>

<bundles_post_ra>
// kernel: tpu_custom_call.1
= control target key start
LH: loop header
LB: loop body
LE: loop exit
PB: predicated region body
PF: predicated region fallthrough
CT: control target
= control target key end

     0   :  { %s1024_s9 = smov 0   ;;  %s1026_s10 = smov 0   ;;  %s1195_s0 = inlined_call_operand.vmem [shape: bf16[2,256,16], index: 0, kind: input, shape index: {}]   ;;  %s1196_s1 = inlined_call_operand.vmem [shape: bf16[2,16,256], index: 1, kind: input, shape index: {}]   ;;  %s1197_s2 = inlined_call_operand.vmem [shape: f32[2,1,1], index: 2, kind: output, shape index: {}]  }
   0x1   :  { %s1028_s11 = smov 0  }
   0x2 LB: > { %s31_s12 = sadd.s32 1, %s1002_s10  ;;  %p893_p0 = scmp.ge.s32.totalorder %s1006_s11, 1  ;;  %s1006_s11 = sphi %s1028_s11, %s12_s11   ;;  %s1002_s10 = sphi %s1026_s10, %s1199_s10   ;;  %s998_s9 = sphi %s1024_s9, %s1198_s9  }
   0x3   : > { %p33_p1 = scmp.ge.s32.totalorder %s31_s12, 2  ;;  %p157_p2 = scmp.lt.s32.totalorder %s1006_s11, 3 }
   0x5   : > { %s1201_s12 = smov (%p33_p1, %s31_s12), 0  ;;  %p158_p3 = pnand %p893_p0, %p157_p2 }
   0x6   : > { %p192_p4 = scmp.lt.s32.totalorder (!%p158_p3), %s998_s9, 1  ;;  %v1008_v0 = vmov (!%p158_p3), 0   ;;  %vm347_vm0 = vcmask (!%p158_p3), 130048   ;;  %vm801_vm1 = vcmask (!%p158_p3), 0  }
   0x7   : > { %161 = sbr.rel (%p158_p3) target bundleno = 537 (0x219), region = 28  ;;  %428 = vmatprep.mubr.bf16.mxu0 (!%p158_p3), %v1008_v0  ;;  %508 = vmatprep.mubr.bf16.mxu1 (!%p158_p3), %v1008_v0 }
   0xe   : > { %s1203_s9 = smov (!%p192_p4, %s998_s9), 1 }
   0xf   : > { %s934_s13 = sshll.u32 %s1203_s9, 7  ;;  %s935_s14 = sshll.u32 %s1203_s9, 4 }
  0x10   : > { %s1049_s17 = scalar_lea.vmem %s1195_s0, %s934_s13  ;;  %s209_s20 = scalar_lea.vmem %s1196_s1, %s935_s14 }
  0x11   : > { %v965_v1 = vld [vmem:[%s209_s20 + $0x4] ss:$8 sps:$4 sm:$0xff]   ;;  %v967_v2 = vld [vmem:[%s209_s20] ss:$8 sps:$4 sm:$0xff]   ;;  %v970_v7 = vld [vmem:[%s1049_s17 + $0x10] sm:$0xff]   ;;  %s214_s23 = scalar_lea.vmem %s1197_s2, %s1203_s9 }
  0x12   : > { %396 = vmatprep.subr.bf16.mxu0 %v965_v1  ;;  %v968_v3 = vld [vmem:[%s1049_s17] sm:$0xff]   ;;  %936 = vmatprep.subr.bf16.mxu1 %v965_v1  ;;  %v969_v5 = vld [vmem:[%s1049_s17 + $0x8] sm:$0xff]   ;;  %v976_v8 = vld [vmem:[%s1049_s17 + $0x50] sm:$0xff]  }
  0x13   : > { %397 = vmatpush1.bf16.msra.mxu0 %v967_v2  ;;  %937 = vmatpush1.bf16.msra.mxu1 %v967_v2  ;;  %v972_v4 = vld [vmem:[%s1049_s17 + $0x40] sm:$0xff]   ;;  %v974_v6 = vld [vmem:[%s1049_s17 + $0x48] sm:$0xff]   ;;  %v971_v9 = vld [vmem:[%s1049_s17 + $0x18] sm:$0xff]  }
  0x14   : > { %v978_v10 = vld [vmem:[%s1049_s17 + $0x58] sm:$0xff]   ;;  %v973_v11 = vld [vmem:[%s1049_s17 + $0x20] sm:$0xff]   ;;  %v975_v13 = vld [vmem:[%s1049_s17 + $0x28] sm:$0xff]  }
  0x15   : > { %v980_v12 = vld [vmem:[%s1049_s17 + $0x60] sm:$0xff]   ;;  %v981_v14 = vld [vmem:[%s1049_s17 + $0x68] sm:$0xff]   ;;  %v977_v15 = vld [vmem:[%s1049_s17 + $0x30] sm:$0xff]  }
  0x16   : > { %916 = vmatmul.mubr.msk.bf16.vlgmr.msra.gmra.mrb[0].mxu0 %vm347_vm0, %v968_v3  ;;  %924 = vmatmul.mubr.msk.bf16.vlgmr.msra.gmra.mrb[0].mxu1 %vm347_vm0, %v972_v4  ;;  %v982_v16 = vld [vmem:[%s1049_s17 + $0x70] sm:$0xff]   ;;  %v979_v17 = vld [vmem:[%s1049_s17 + $0x38] sm:$0xff]  }
  0x17   : > { %438 = vmatprep.mubr.bf16.mxu0 %v1008_v0  ;;  %518 = vmatprep.mubr.bf16.mxu1 %v1008_v0  ;;  %v983_v18 = vld [vmem:[%s1049_s17 + $0x78] sm:$0xff]  }
  0x1e   : > { %917 = vmatmul.mubr.msk.bf16.gmra.mrb[4].mxu0 %vm347_vm0, %v969_v5  ;;  %925 = vmatmul.mubr.msk.bf16.gmra.mrb[4].mxu1 %vm347_vm0, %v974_v6 }
  0x1f   : > { %448 = vmatprep.mubr.bf16.mxu0 %v1008_v0  ;;  %528 = vmatprep.mubr.bf16.mxu1 %v1008_v0 }
  0x26   : > { %918 = vmatmul.mubr.msk.bf16.gmra.mrb[8].mxu0 %vm347_vm0, %v970_v7  ;;  %926 = vmatmul.mubr.msk.bf16.gmra.mrb[8].mxu1 %vm347_vm0, %v976_v8 }
  0x27   : > { %458 = vmatprep.mubr.bf16.mxu0 %v1008_v0  ;;  %538 = vmatprep.mubr.bf16.mxu1 %v1008_v0 }
  0x2e   : > { %919 = vmatmul.mubr.msk.bf16.gmra.mrb[12].mxu0 %vm347_vm0, %v971_v9  ;;  %927 = vmatmul.mubr.msk.bf16.gmra.mrb[12].mxu1 %vm347_vm0, %v978_v10 }
  0x2f   : > { %468 = vmatprep.mubr.bf16.mxu0 %v1008_v0  ;;  %548 = vmatprep.mubr.bf16.mxu1 %v1008_v0 }
  0x36   : > { %920 = vmatmul.mubr.msk.bf16.gmra.mrb[16].mxu0 %vm347_vm0, %v973_v11  ;;  %928 = vmatmul.mubr.msk.bf16.gmra.mrb[16].mxu1 %vm347_vm0, %v980_v12 }
  0x37   : > { %478 = vmatprep.mubr.bf16.mxu0 %v1008_v0  ;;  %558 = vmatprep.mubr.bf16.mxu1 %v1008_v0 }
  0x3e   : > { %921 = vmatmul.mubr.msk.bf16.gmra.mrb[20].mxu0 %vm347_vm0, %v975_v13  ;;  %929 = vmatmul.mubr.msk.bf16.gmra.mrb[20].mxu1 %vm347_vm0, %v981_v14 }
  0x3f   : > { %488 = vmatprep.mubr.bf16.mxu0 %v1008_v0  ;;  %568 = vmatprep.mubr.bf16.mxu1 %v1008_v0 }
  0x46   : > { %922 = vmatmul.mubr.msk.bf16.gmra.mrb[24].mxu0 %vm347_vm0, %v977_v15  ;;  %930 = vmatmul.mubr.msk.bf16.gmra.mrb[24].mxu1 %vm347_vm0, %v982_v16 }
  0x47   : > { %498 = vmatprep.mubr.bf16.mxu0 %v1008_v0  ;;  %578 = vmatprep.mubr.bf16.mxu1 %v1008_v0 }
  0x4e   : > { %923 = vmatmul.mubr.msk.bf16.gmra.mrb[28].mxu0 %vm347_vm0, %v979_v17  ;;  %931 = vmatmul.mubr.msk.bf16.gmra.mrb[28].mxu1 %vm347_vm0, %v983_v18 }
  0xe9   : > { %v430_v19 = vpop.f32.mrb[0].mxu0  ;;  %v1086_v22 = vpop.f32.mrb[0].mxu1 }
  0xea   : > { %v432_v20 = vpop.f32.mrb[1].mxu0  ;;  %v589_v23 = vand.u32 2147483647, %v430_v19  ;;  %v1088_v26 = vpop.f32.mrb[1].mxu1 }
  0xeb   : > { %v434_v21 = vpop.f32.mrb[2].mxu0  ;;  %v590_v27 = vand.u32 2147483647, %v432_v20  ;;  %v1090_v29 = vpop.f32.mrb[2].mxu1 }
  0xec   : > { %v591_v24 = vand.u32 2147483647, %v434_v21  ;;  %v436_v25 = vpop.f32.mrb[3].mxu0  ;;  %v1092_v31 = vpop.f32.mrb[3].mxu1 }
  0xed   : > { %v592_v28 = vand.u32 2147483647, %v436_v25 }
  0xee   : > { %v717_v30 = vadd.f32 %v591_v24, %v589_v23 }
  0xef   : > { %v748_v32 = vadd.f32 %v592_v28, %v590_v27 }
  0xf1   : > { %v440_v33 = vpop.f32.mrb[4].mxu0  ;;  %v1094_v38 = vpop.f32.mrb[4].mxu1 }
  0xf2   : > { %v593_v34 = vand.u32 2147483647, %v440_v33  ;;  %v442_v35 = vpop.f32.mrb[5].mxu0  ;;  %v1096_v42 = vpop.f32.mrb[5].mxu1 }
  0xf3   : > { %v594_v36 = vand.u32 2147483647, %v442_v35  ;;  %v444_v37 = vpop.f32.mrb[6].mxu0  ;;  %v1098_v45 = vpop.f32.mrb[6].mxu1 }
  0xf4   : > { %v718_v39 = vadd.f32 %v717_v30, %v593_v34  ;;  %v595_v40 = vand.u32 2147483647, %v444_v37  ;;  %v446_v41 = vpop.f32.mrb[7].mxu0  ;;  %v1100_v47 = vpop.f32.mrb[7].mxu1 }
  0xf5   : > { %v749_v43 = vadd.f32 %v748_v32, %v594_v36  ;;  %v596_v44 = vand.u32 2147483647, %v446_v41 }
  0xf6   : > { %v719_v46 = vadd.f32 %v718_v39, %v595_v40 }
  0xf7   : > { %v750_v48 = vadd.f32 %v749_v43, %v596_v44 }
  0xf9   : > { %v450_v49 = vpop.f32.mrb[8].mxu0  ;;  %v1102_v54 = vpop.f32.mrb[8].mxu1 }
  0xfa   : > { %v597_v50 = vand.u32 2147483647, %v450_v49  ;;  %v452_v51 = vpop.f32.mrb[9].mxu0  ;;  %v1104_v58 = vpop.f32.mrb[9].mxu1 }
  0xfb   : > { %v598_v52 = vand.u32 2147483647, %v452_v51  ;;  %v454_v53 = vpop.f32.mrb[10].mxu0  ;;  %v1106_v61 = vpop.f32.mrb[10].mxu1 }
  0xfc   : > { %v720_v55 = vadd.f32 %v719_v46, %v597_v50  ;;  %v599_v56 = vand.u32 2147483647, %v454_v53  ;;  %v456_v57 = vpop.f32.mrb[11].mxu0  ;;  %v1108_v63 = vpop.f32.mrb[11].mxu1 }
  0xfd   : > { %v751_v59 = vadd.f32 %v750_v48, %v598_v52  ;;  %v600_v60 = vand.u32 2147483647, %v456_v57 }
  0xfe   : > { %v721_v62 = vadd.f32 %v720_v55, %v599_v56 }
  0xff   : > { %v752_v0 = vadd.f32 %v751_v59, %v600_v60 }
 0x101   : > { %v460_v1 = vpop.f32.mrb[12].mxu0  ;;  %v1110_v6 = vpop.f32.mrb[12].mxu1 }
 0x102   : > { %v601_v2 = vand.u32 2147483647, %v460_v1  ;;  %v462_v3 = vpop.f32.mrb[13].mxu0  ;;  %v1112_v10 = vpop.f32.mrb[13].mxu1 }
 0x103   : > { %v602_v4 = vand.u32 2147483647, %v462_v3  ;;  %v464_v5 = vpop.f32.mrb[14].mxu0  ;;  %v1114_v13 = vpop.f32.mrb[14].mxu1 }
 0x104   : > { %v722_v7 = vadd.f32 %v721_v62, %v601_v2  ;;  %v603_v8 = vand.u32 2147483647, %v464_v5  ;;  %v466_v9 = vpop.f32.mrb[15].mxu0  ;;  %v1116_v15 = vpop.f32.mrb[15].mxu1 }
 0x105   : > { %v753_v11 = vadd.f32 %v752_v0, %v602_v4  ;;  %v604_v12 = vand.u32 2147483647, %v466_v9 }
 0x106   : > { %v723_v14 = vadd.f32 %v722_v7, %v603_v8 }
 0x107   : > { %v754_v16 = vadd.f32 %v753_v11, %v604_v12 }
 0x109   : > { %v470_v17 = vpop.f32.mrb[16].mxu0  ;;  %v1118_v23 = vpop.f32.mrb[16].mxu1 }
 0x10a   : > { %v605_v18 = vand.u32 2147483647, %v470_v17  ;;  %v472_v19 = vpop.f32.mrb[17].mxu0  ;;  %v1120_v28 = vpop.f32.mrb[17].mxu1 }
 0x10b   : > { %v606_v20 = vand.u32 2147483647, %v472_v19  ;;  %v474_v21 = vpop.f32.mrb[18].mxu0  ;;  %v1122_v33 = vpop.f32.mrb[18].mxu1 }
 0x10c   : > { %v724_v24 = vadd.f32 %v723_v14, %v605_v18  ;;  %v607_v25 = vand.u32 2147483647, %v474_v21  ;;  %v476_v27 = vpop.f32.mrb[19].mxu0  ;;  %v1124_v35 = vpop.f32.mrb[19].mxu1 }
 0x10d   : > { %v755_v30 = vadd.f32 %v754_v16, %v606_v20  ;;  %v608_v32 = vand.u32 2147483647, %v476_v27 }
 0x10e   : > { %v725_v34 = vadd.f32 %v724_v24, %v607_v25 }
 0x10f   : > { %v756_v36 = vadd.f32 %v755_v30, %v608_v32 }
 0x111   : > { %v480_v37 = vpop.f32.mrb[20].mxu0  ;;  %v1126_v44 = vpop.f32.mrb[20].mxu1 }
 0x112   : > { %v609_v39 = vand.u32 2147483647, %v480_v37  ;;  %v482_v40 = vpop.f32.mrb[21].mxu0  ;;  %v1128_v50 = vpop.f32.mrb[21].mxu1 }
 0x113   : > { %v610_v41 = vand.u32 2147483647, %v482_v40  ;;  %v484_v43 = vpop.f32.mrb[22].mxu0  ;;  %v1130_v53 = vpop.f32.mrb[22].mxu1 }
 0x114   : > { %v726_v46 = vadd.f32 %v725_v34, %v609_v39  ;;  %v611_v48 = vand.u32 2147483647, %v484_v43  ;;  %v486_v49 = vpop.f32.mrb[23].mxu0  ;;  %v1132_v56 = vpop.f32.mrb[23].mxu1  ;;  %v621_v39 = vand.u32 2147483647, %v1086_v22 }
 0x115   : > { %v757_v51 = vadd.f32 %v756_v36, %v610_v41  ;;  %v612_v52 = vand.u32 2147483647, %v486_v49  ;;  %v622_v43 = vand.u32 2147483647, %v1088_v26  ;;  %v627_v22 = vand.u32 2147483647, %v1098_v45 }
 0x116   : > { %v727_v55 = vadd.f32 %v726_v46, %v611_v48  ;;  %v623_v48 = vand.u32 2147483647, %v1090_v29  ;;  %v629_v26 = vand.u32 2147483647, %v1102_v54  ;;  %v630_v29 = vand.u32 2147483647, %v1104_v58 }
 0x117   : > { %v758_v57 = vadd.f32 %v757_v51, %v612_v52  ;;  %v624_v51 = vand.u32 2147483647, %v1092_v31  ;;  %v631_v31 = vand.u32 2147483647, %v1106_v61  ;;  %v634_v45 = vand.u32 2147483647, %v1112_v10 }
 0x118   : > { %v636_v54 = vand.u32 2147483647, %v1116_v15  ;;  %v637_v58 = vand.u32 2147483647, %v1118_v23  ;;  %v638_v61 = vand.u32 2147483647, %v1120_v28 }
 0x119   : > { %v490_v59 = vpop.f32.mrb[24].mxu0  ;;  %v1134_v2 = vpop.f32.mrb[24].mxu1 }
 0x11a   : > { %v613_v60 = vand.u32 2147483647, %v490_v59  ;;  %v492_v62 = vpop.f32.mrb[25].mxu0  ;;  %v1136_v7 = vpop.f32.mrb[25].mxu1  ;;  %v626_v59 = vand.u32 2147483647, %v1096_v42 }
 0x11b   : > { %v614_v0 = vand.u32 2147483647, %v492_v62  ;;  %v494_v1 = vpop.f32.mrb[26].mxu0  ;;  %v1138_v11 = vpop.f32.mrb[26].mxu1  ;;  %v633_v42 = vand.u32 2147483647, %v1110_v6 }
 0x11c   : > { %v728_v3 = vadd.f32 %v727_v55, %v613_v60  ;;  %v615_v4 = vand.u32 2147483647, %v494_v1  ;;  %v496_v5 = vpop.f32.mrb[27].mxu0  ;;  %v1140_v14 = vpop.f32.mrb[27].mxu1  ;;  %v625_v55 = vand.u32 2147483647, %v1094_v38 }
 0x11d   : > { %v759_v8 = vadd.f32 %v758_v57, %v614_v0  ;;  %v616_v9 = vand.u32 2147483647, %v496_v5  ;;  %v628_v0 = vand.u32 2147483647, %v1100_v47  ;;  %v632_v38 = vand.u32 2147483647, %v1108_v63 }
 0x11e   : > { %v729_v12 = vadd.f32 %v728_v3, %v615_v4  ;;  %v635_v47 = vand.u32 2147483647, %v1114_v13 }
 0x11f   : > { %v760_v16 = vadd.f32 %v759_v8, %v616_v9 }
 0x121   : > { %v500_v17 = vpop.f32.mrb[28].mxu0  ;;  %v1142_v24 = vpop.f32.mrb[28].mxu1 }
 0x122   : > { %v617_v18 = vand.u32 2147483647, %v500_v17  ;;  %v502_v19 = vpop.f32.mrb[29].mxu0  ;;  %v1144_v32 = vpop.f32.mrb[29].mxu1 }
 0x123   : > { %v618_v20 = vand.u32 2147483647, %v502_v19  ;;  %v504_v21 = vpop.f32.mrb[30].mxu0  ;;  %v1146_v37 = vpop.f32.mrb[30].mxu1 }
 0x124   : > { %v730_v25 = vadd.f32 %v729_v12, %v617_v18  ;;  %v619_v27 = vand.u32 2147483647, %v504_v21  ;;  %v506_v30 = vpop.f32.mrb[31].mxu0  ;;  %v1149_v41 = vpop.f32.mrb[31].mxu1  ;;  %v640_v21 = vand.u32 2147483647, %v1124_v35 }
 0x125   : > { %v761_v34 = vadd.f32 %v760_v16, %v618_v20  ;;  %v620_v36 = vand.u32 2147483647, %v506_v30  ;;  %v639_v20 = vand.u32 2147483647, %v1122_v33  ;;  %v643_v30 = vand.u32 2147483647, %v1130_v53 }
 0x126   : > { %v731_v40 = vadd.f32 %v730_v25, %v619_v27  ;;  %v641_v25 = vand.u32 2147483647, %v1126_v44  ;;  %v642_v27 = vand.u32 2147483647, %v1128_v50  ;;  %v646_v33 = vand.u32 2147483647, %v1136_v7 }
 0x127   : > { %v762_v46 = vadd.f32 %v761_v34, %v620_v36  ;;  %v644_v34 = vand.u32 2147483647, %v1132_v56  ;;  %v645_v36 = vand.u32 2147483647, %v1134_v2  ;;  %v647_v35 = vand.u32 2147483647, %v1138_v11 }
 0x128   : > { %v732_v49 = vadd.f32 %v731_v40, %v621_v39  ;;  %v649_v44 = vand.u32 2147483647, %v1142_v24  ;;  %v648_v50 = vand.u32 2147483647, %v1140_v14  ;;  %v651_v56 = vand.u32 2147483647, %v1146_v37 }
 0x129   : > { %v763_v52 = vadd.f32 %v762_v46, %v622_v43  ;;  %v650_v46 = vand.u32 2147483647, %v1144_v32 }
 0x12a   : > { %v733_v57 = vadd.f32 %v732_v49, %v623_v48 }
 0x12b   : > { %v764_v60 = vadd.f32 %v763_v52, %v624_v51  ;;  %v652_v51 = vand.u32 2147483647, %v1149_v41 }
 0x12c   : > { %v734_v62 = vadd.f32 %v733_v57, %v625_v55 }
 0x12d   : > { %v765_v1 = vadd.f32 %v764_v60, %v626_v59 }
 0x12e   : > { %v735_v3 = vadd.f32 %v734_v62, %v627_v22 }
 0x12f   : > { %v766_v4 = vadd.f32 %v765_v1, %v628_v0 }
 0x130   : > { %v736_v5 = vadd.f32 %v735_v3, %v629_v26 }
 0x131   : > { %v767_v8 = vadd.f32 %v766_v4, %v630_v29 }
 0x132   : > { %v737_v9 = vadd.f32 %v736_v5, %v631_v31 }
 0x133   : > { %v768_v12 = vadd.f32 %v767_v8, %v632_v38 }
 0x134   : > { %v738_v16 = vadd.f32 %v737_v9, %v633_v42 }
 0x135   : > { %v769_v17 = vadd.f32 %v768_v12, %v634_v45 }
 0x136   : > { %v739_v18 = vadd.f32 %v738_v16, %v635_v47 }
 0x137   : > { %v770_v19 = vadd.f32 %v769_v17, %v636_v54 }
 0x138   : > { %v740_v63 = vadd.f32 %v739_v18, %v637_v58 }
 0x139   : > { %v771_v6 = vadd.f32 %v770_v19, %v638_v61 }
 0x13a   : > { %v741_v10 = vadd.f32 %v740_v63, %v639_v20 }
 0x13b   : > { %v772_v13 = vadd.f32 %v771_v6, %v640_v21 }
 0x13c   : > { %v742_v15 = vadd.f32 %v741_v10, %v641_v25 }
 0x13d   : > { %v773_v23 = vadd.f32 %v772_v13, %v642_v27 }
 0x13e   : > { %v743_v28 = vadd.f32 %v742_v15, %v643_v30 }
 0x13f   : > { %v774_v39 = vadd.f32 %v773_v23, %v644_v34 }
 0x140   : > { %v744_v40 = vadd.f32 %v743_v28, %v645_v36 }
 0x141   : > { %v775_v43 = vadd.f32 %v774_v39, %v646_v33 }
 0x142   : > { %v745_v53 = vadd.f32 %v744_v40, %v647_v35 }
 0x143   : > { %v776_v48 = vadd.f32 %v775_v43, %v648_v50 }
 0x144   : > { %v746_v49 = vadd.f32 %v745_v53, %v649_v44 }
 0x145   : > { %v777_v2 = vadd.f32 %v776_v48, %v650_v46 }
 0x146   : > { %v747_v7 = vadd.f32 %v746_v49, %v651_v56 }
 0x147   : > { %v778_v52 = vadd.f32 %v777_v2, %v652_v51 }
 0x149   : > { %v790_v55 = vadd.f32 %v778_v52, %v747_v7 }
 0x14b   : > { %791 = vadd.xlane.f32.xlu0 %v790_v55 }
 0x1d8   : > { %v792_v11 = vpop.xlane.xlu0 %791 }
 0x1d9   : > { %v793_v24 = vrot.slane %v792_v11, 4 }
 0x1db   : > { %v794_v57 = vadd.f32 %v793_v24, %v792_v11 }
 0x1dd   : > { %v795_v59 = vrot.slane %v794_v57, 2 }
 0x1df   : > { %v796_v14 = vadd.f32 %v795_v59, %v794_v57 }
 0x1e1   : > { %v797_v60 = vrot.slane %v796_v14, 1 }
 0x1e3   : > { %v798_v32 = vadd.f32 %v797_v60, %v796_v14 }
 0x1e5   : > { %938 = vpush %v798_v32 }
 0x216   : > { %s939_s24 = spop %938 }
 0x217   : > { %v800_v37 = vstv %s939_s24 }
 0x218   : > { %802 = vst.msk [vmem:[%s214_s23] sm:$0x1] %vm801_vm1, %v800_v37 }
 0x219 PF: > { %s12_s11 = sadd.s32 1, %s1006_s11   ;;  %s1198_s9 = smov %s1002_s10 }
 0x21a   : > { %p9_p5 = scmp.ge.s32.totalorder %s12_s11, 4   ;;  %s1199_s10 = smov %s1201_s12 }
 0x21c   :  { %11 = sbr.rel (!%p9_p5) target bundleno = 2 (0x2), region = 69 }

</bundles_post_ra>
